<compile_context>
chip_gen: v5e
topology: v5e:2x2
jax: 0.10.0
libtpu: 0.0.40
codegen_flags: <defaults>
</compile_context>

<pallas_src>
import numpy as np
import jax
import jax.numpy as jnp
from jax.experimental import pallas as pl
from jax.experimental.pallas import tpu as pltpu

SELU_ALPHA = 1.6732632423543772
SELU_SCALE = 1.0507009873554805
HIDDEN = 256
LANE = 128


def _selu(x):
    return SELU_SCALE * jnp.where(x > 0, x, SELU_ALPHA * (jnp.exp(x) - 1.0))


def _head_width(num_actions):
    return max(LANE, pl.cdiv(num_actions + 1, LANE) * LANE)


# ----------------------------- Pallas kernel --------------------------------

def actor_critic_kernel(obs_ref, w1_ref, b1_ref, w2_ref, b2_ref, w3_ref, b3_ref,
                        out_ref):
    H = HIDDEN
    obs = obs_ref[...].astype(jnp.bfloat16)                              # [TB, 4]

    # Fused layer 1 (actor | critic): [TB, 4] @ [4, 512] -> [TB, 512]
    h1 = jnp.dot(obs, w1_ref[...], preferred_element_type=jnp.float32) + b1_ref[...]
    h1 = _selu(h1)

    ha = h1[:, :H].astype(jnp.bfloat16)   # actor hidden
    hc = h1[:, H:].astype(jnp.bfloat16)   # critic hidden

    # Layer 2: two 256x256 bf16 dots on lane-slices of one packed weight.
    h2a = _selu(jnp.dot(ha, w2_ref[:, :H], preferred_element_type=jnp.float32)
                + b2_ref[:, :H])
    h2c = _selu(jnp.dot(hc, w2_ref[:, H:], preferred_element_type=jnp.float32)
                + b2_ref[:, H:])

    # Fused, lane-dense output head: actions_mean in lanes [0:A], value in lane A,
    # remaining lanes are exact zeros (w3/b3 are zero-padded).  Single unmasked
    # [TB, 128] store.
    out = (jnp.dot(h2a.astype(jnp.bfloat16), w3_ref[:H, :],
                   preferred_element_type=jnp.float32)
           + jnp.dot(h2c.astype(jnp.bfloat16), w3_ref[H:, :],
                     preferred_element_type=jnp.float32)
           + b3_ref[...])
    out_ref[...] = out


def actor_critic_forward(obs, params, *, tile_batch=256):
    """Returns (actions_mean [B, A], value [B, 1])."""
    B, num_obs = obs.shape
    A = int(params["num_actions"])
    head = params["b3"].shape[1]

    # Pad batch to a multiple of 8 (f32 sublane), then to a multiple of the tile.
    padded_B = pl.cdiv(B, 8) * 8
    TB = min(padded_B, tile_batch)          # TB is a multiple of 8
    padded_B = pl.cdiv(padded_B, TB) * TB
    if padded_B != B:
        obs = jnp.pad(obs, ((0, padded_B - B), (0, 0)))

    const = lambda i: (0, 0)                # weights stay VMEM-resident across tiles
    out = pl.pallas_call(
        actor_critic_kernel,
        grid=(padded_B // TB,),
        in_specs=[
            pl.BlockSpec((TB, num_obs), lambda i: (i, 0)),        # obs tile
            pl.BlockSpec((num_obs, 2 * HIDDEN), const),           # w1 fused
            pl.BlockSpec((1, 2 * HIDDEN), const),                 # b1 fused
            pl.BlockSpec((HIDDEN, 2 * HIDDEN), const),            # w2 packed
            pl.BlockSpec((1, 2 * HIDDEN), const),                 # b2 packed
            pl.BlockSpec((2 * HIDDEN, head), const),              # w3 fused+padded
            pl.BlockSpec((1, head), const),                       # b3 fused+padded
        ],
        out_specs=pl.BlockSpec((TB, head), lambda i: (i, 0)),
        out_shape=jax.ShapeDtypeStruct((padded_B, head), jnp.float32),
        compiler_params=pltpu.CompilerParams(
            dimension_semantics=("parallel",)),
    )(obs, params["w1"], params["b1"], params["w2"], params["b2"],
      params["w3"], params["b3"])

    mean = out[:B, :A]
    value = out[:B, A:A + 1]
    return mean, value


# ---------------- deterministic parameter construction (plain JAX glue) -----

def _orthogonal(key, out_dim, in_dim, gain):
    """PyTorch-style orthogonal_ init, returned as [in_dim, out_dim] (pre-transposed)."""
    rows, cols = out_dim, in_dim
    flat = jax.random.normal(key, (max(rows, cols), min(rows, cols)), jnp.float32)
    q, r = jnp.linalg.qr(flat)
    q = q * jnp.sign(jnp.diag(r))
    if rows < cols:
        q = q.T
    w = gain * q[:rows, :cols]               # [out, in], PyTorch convention
    return w.T.astype(jnp.float32)           # [in, out] for x @ W


def _bias(key, out_dim, fan_in):
    bound = 1.0 / np.sqrt(fan_in)
    return jax.random.uniform(key, (1, out_dim), jnp.float32, -bound, bound)


def make_params(key, num_obs=4, hidden=256, num_actions=1, initial_std=1.0):
    assert hidden == HIDDEN
    ks = jax.random.split(key, 12)
    sq2 = float(np.sqrt(2.0))
    # actor (gains: sqrt(2), sqrt(2), 0.01)
    w1a = _orthogonal(ks[0], hidden, num_obs, sq2);        b1a = _bias(ks[1], hidden, num_obs)
    w2a = _orthogonal(ks[2], hidden, hidden, sq2);         b2a = _bias(ks[3], hidden, hidden)
    w3a = _orthogonal(ks[4], num_actions, hidden, 0.01);   b3a = _bias(ks[5], num_actions, hidden)
    # critic (gains: sqrt(2), sqrt(2), 1.0)
    w1c = _orthogonal(ks[6], hidden, num_obs, sq2);        b1c = _bias(ks[7], hidden, num_obs)
    w2c = _orthogonal(ks[8], hidden, hidden, sq2);         b2c = _bias(ks[9], hidden, hidden)
    w3c = _orthogonal(ks[10], 1, hidden, 1.0);             b3c = _bias(ks[11], 1, hidden)

    head = _head_width(num_actions)
    # Fused, zero-padded head: rows 0:256 map actor hidden -> mean lanes [0:A],
    # rows 256:512 map critic hidden -> value lane [A]; all other lanes zero.
    w3 = jnp.zeros((2 * hidden, head), jnp.float32)
    w3 = w3.at[:hidden, :num_actions].set(w3a)
    w3 = w3.at[hidden:, num_actions].set(w3c[:, 0])
    b3 = jnp.zeros((1, head), jnp.float32)
    b3 = b3.at[:, :num_actions].set(b3a)
    b3 = b3.at[:, num_actions:num_actions + 1].set(b3c)

    return {
        "w1": jnp.concatenate([w1a, w1c], axis=1).astype(jnp.bfloat16),   # [4, 512]
        "b1": jnp.concatenate([b1a, b1c], axis=1),                        # [1, 512] f32
        "w2": jnp.concatenate([w2a, w2c], axis=1).astype(jnp.bfloat16),   # [256, 512]
        "b2": jnp.concatenate([b2a, b2c], axis=1),                        # [1, 512] f32
        "w3": w3.astype(jnp.bfloat16),                                    # [512, head]
        "b3": b3,                                                         # [1, head] f32
        "log_std": jnp.full((num_actions,), float(np.log(initial_std)), jnp.float32),
        "num_actions": int(num_actions),
    }


def _reference(obs, p):
    """Pure-JAX reference with the same bf16 storage/cast semantics."""
    A, H = p["num_actions"], HIDDEN
    x = obs.astype(jnp.bfloat16)
    h1 = _selu(jnp.dot(x, p["w1"], preferred_element_type=jnp.float32) + p["b1"])
    ha = h1[:, :H].astype(jnp.bfloat16)
    hc = h1[:, H:].astype(jnp.bfloat16)
    h2a = _selu(jnp.dot(ha, p["w2"][:, :H], preferred_element_type=jnp.float32)
                + p["b2"][:, :H])
    h2c = _selu(jnp.dot(hc, p["w2"][:, H:], preferred_element_type=jnp.float32)
                + p["b2"][:, H:])
    out = (jnp.dot(h2a.astype(jnp.bfloat16), p["w3"][:H],
                   preferred_element_type=jnp.float32)
           + jnp.dot(h2c.astype(jnp.bfloat16), p["w3"][H:],
                     preferred_element_type=jnp.float32)
           + p["b3"])
    return out[:, :A], out[:, A:A + 1]


if __name__ == "__main__":
    key = jax.random.PRNGKey(0)
    k_param, k_obs = jax.random.split(key)

    num_obs, num_actions, batch = 4, 1, 12     # batch deliberately not a multiple of 8
    params = make_params(k_param, num_obs=num_obs, hidden=HIDDEN,
                         num_actions=num_actions, initial_std=1.0)

    observations = jax.random.normal(k_obs, (batch, num_obs), jnp.float32)

    actions_mean, value = actor_critic_forward(observations, params)
    actions_mean = jax.block_until_ready(actions_mean)
    value = jax.block_until_ready(value)

    # log_std broadcast like `self.log_std.repeat(actions_mean.shape[0], 1)` (glue)
    log_std_rep = jnp.broadcast_to(params["log_std"][None, :], (batch, num_actions))
    log_std_rep = jax.block_until_ready(log_std_rep)

    ref_mean, ref_value = _reference(observations, params)
    np.testing.assert_allclose(np.asarray(actions_mean), np.asarray(ref_mean),
                               rtol=1e-3, atol=1e-3)
    np.testing.assert_allclose(np.asarray(value), np.asarray(ref_value),
                               rtol=1e-3, atol=1e-3)

    assert actions_mean.shape == (batch, num_actions)
    assert value.shape == (batch, 1)
    print("KERNEL_OK")
</pallas_src>

<mosaic_0001>
module attributes {stable_mosaic.version = 11 : i64} {
  func.func @actor_critic_kernel(%arg0: i32, %arg1: memref<16x4xf32, #tpu.memory_space<vmem>>, %arg2: memref<4x512xbf16, #tpu.memory_space<vmem>>, %arg3: memref<1x512xf32, #tpu.memory_space<vmem>>, %arg4: memref<256x512xbf16, #tpu.memory_space<vmem>>, %arg5: memref<1x512xf32, #tpu.memory_space<vmem>>, %arg6: memref<512x128xbf16, #tpu.memory_space<vmem>>, %arg7: memref<1x128xf32, #tpu.memory_space<vmem>>, %arg8: memref<16x128xf32, #tpu.memory_space<vmem>>) attributes {dimension_semantics = [#tpu.dimension_semantics<parallel>], iteration_bounds = array<i64: 1>, scalar_prefetch = 0 : i64, scratch_operands = 0 : i64, tpu.core_type = #tpu.core_type<tc>, window_params = [{transform_indices = @transform_0, window_bounds = array<i64: 16, 4>}, {pipeline_mode = #tpu.pipeline_mode<synchronous>, transform_indices = @transform_1, window_bounds = array<i64: 4, 512>}, {pipeline_mode = #tpu.pipeline_mode<synchronous>, transform_indices = @transform_2, window_bounds = array<i64: 1, 512>}, {pipeline_mode = #tpu.pipeline_mode<synchronous>, transform_indices = @transform_3, window_bounds = array<i64: 256, 512>}, {pipeline_mode = #tpu.pipeline_mode<synchronous>, transform_indices = @transform_4, window_bounds = array<i64: 1, 512>}, {pipeline_mode = #tpu.pipeline_mode<synchronous>, transform_indices = @transform_5, window_bounds = array<i64: 512, 128>}, {pipeline_mode = #tpu.pipeline_mode<synchronous>, transform_indices = @transform_6, window_bounds = array<i64: 1, 128>}, {transform_indices = @transform_7, window_bounds = array<i64: 16, 128>}]} {
    %c0 = arith.constant 0 : index
    %c0_0 = arith.constant 0 : index
    %0 = vector.load %arg1[%c0, %c0_0] : memref<16x4xf32, #tpu.memory_space<vmem>>, vector<16x4xf32>
    %1 = arith.truncf %0 : vector<16x4xf32> to vector<16x4xbf16>
    %c0_1 = arith.constant 0 : index
    %c0_2 = arith.constant 0 : index
    %2 = vector.load %arg2[%c0_1, %c0_2] : memref<4x512xbf16, #tpu.memory_space<vmem>>, vector<4x512xbf16>
    %cst = arith.constant dense<0.000000e+00> : vector<16x512xf32>
    %3 = tpu.matmul %1, %2, %cst {dimension_numbers = #tpu.dot_dimension_numbers<[1], [0], [0], [1], [0, 0, 1, 1], [], []>} : vector<16x4xbf16>, vector<4x512xbf16>, vector<16x512xf32> -> vector<16x512xf32>
    %c0_3 = arith.constant 0 : index
    %c0_4 = arith.constant 0 : index
    %4 = vector.load %arg3[%c0_3, %c0_4] : memref<1x512xf32, #tpu.memory_space<vmem>>, vector<1x512xf32>
    %5 = vector.broadcast %4 : vector<1x512xf32> to vector<16x512xf32>
    %6 = arith.addf %3, %5 : vector<16x512xf32>
    %cst_5 = arith.constant 0.000000e+00 : f32
    %7 = vector.broadcast %cst_5 : f32 to vector<16x512xf32>
    %8 = arith.cmpf ogt, %6, %7 : vector<16x512xf32>
    %9 = math.exp %6 : vector<16x512xf32>
    %cst_6 = arith.constant 1.000000e+00 : f32
    %10 = vector.broadcast %cst_6 : f32 to vector<16x512xf32>
    %11 = arith.subf %9, %10 : vector<16x512xf32>
    %cst_7 = arith.constant 1.67326319 : f32
    %12 = vector.broadcast %cst_7 : f32 to vector<16x512xf32>
    %13 = arith.mulf %12, %11 : vector<16x512xf32>
    %14 = arith.select %8, %6, %13 : vector<16x512xi1>, vector<16x512xf32>
    %cst_8 = arith.constant 1.05070102 : f32
    %15 = vector.broadcast %cst_8 : f32 to vector<16x512xf32>
    %16 = arith.mulf %15, %14 : vector<16x512xf32>
    %17 = vector.extract_strided_slice %16 {offsets = [0, 0], sizes = [16, 256], strides = [1, 1]} : vector<16x512xf32> to vector<16x256xf32>
    %18 = arith.truncf %17 : vector<16x256xf32> to vector<16x256xbf16>
    %19 = vector.extract_strided_slice %16 {offsets = [0, 256], sizes = [16, 256], strides = [1, 1]} : vector<16x512xf32> to vector<16x256xf32>
    %20 = arith.truncf %19 : vector<16x256xf32> to vector<16x256xbf16>
    %c0_9 = arith.constant 0 : index
    %c0_10 = arith.constant 0 : index
    %21 = vector.load %arg4[%c0_9, %c0_10] : memref<256x512xbf16, #tpu.memory_space<vmem>>, vector<256x256xbf16>
    %cst_11 = arith.constant dense<0.000000e+00> : vector<16x256xf32>
    %22 = tpu.matmul %18, %21, %cst_11 {dimension_numbers = #tpu.dot_dimension_numbers<[1], [0], [0], [1], [0, 0, 1, 1], [], []>} : vector<16x256xbf16>, vector<256x256xbf16>, vector<16x256xf32> -> vector<16x256xf32>
    %c0_12 = arith.constant 0 : index
    %c0_13 = arith.constant 0 : index
    %23 = vector.load %arg5[%c0_12, %c0_13] : memref<1x512xf32, #tpu.memory_space<vmem>>, vector<1x256xf32>
    %24 = vector.broadcast %23 : vector<1x256xf32> to vector<16x256xf32>
    %25 = arith.addf %22, %24 : vector<16x256xf32>
    %cst_14 = arith.constant 0.000000e+00 : f32
    %26 = vector.broadcast %cst_14 : f32 to vector<16x256xf32>
    %27 = arith.cmpf ogt, %25, %26 : vector<16x256xf32>
    %28 = math.exp %25 : vector<16x256xf32>
    %cst_15 = arith.constant 1.000000e+00 : f32
    %29 = vector.broadcast %cst_15 : f32 to vector<16x256xf32>
    %30 = arith.subf %28, %29 : vector<16x256xf32>
    %cst_16 = arith.constant 1.67326319 : f32
    %31 = vector.broadcast %cst_16 : f32 to vector<16x256xf32>
    %32 = arith.mulf %31, %30 : vector<16x256xf32>
    %33 = arith.select %27, %25, %32 : vector<16x256xi1>, vector<16x256xf32>
    %cst_17 = arith.constant 1.05070102 : f32
    %34 = vector.broadcast %cst_17 : f32 to vector<16x256xf32>
    %35 = arith.mulf %34, %33 : vector<16x256xf32>
    %c0_18 = arith.constant 0 : index
    %c256 = arith.constant 256 : index
    %36 = vector.load %arg4[%c0_18, %c256] : memref<256x512xbf16, #tpu.memory_space<vmem>>, vector<256x256xbf16>
    %cst_19 = arith.constant dense<0.000000e+00> : vector<16x256xf32>
    %37 = tpu.matmul %20, %36, %cst_19 {dimension_numbers = #tpu.dot_dimension_numbers<[1], [0], [0], [1], [0, 0, 1, 1], [], []>} : vector<16x256xbf16>, vector<256x256xbf16>, vector<16x256xf32> -> vector<16x256xf32>
    %c0_20 = arith.constant 0 : index
    %c256_21 = arith.constant 256 : index
    %38 = vector.load %arg5[%c0_20, %c256_21] : memref<1x512xf32, #tpu.memory_space<vmem>>, vector<1x256xf32>
    %39 = vector.broadcast %38 : vector<1x256xf32> to vector<16x256xf32>
    %40 = arith.addf %37, %39 : vector<16x256xf32>
    %cst_22 = arith.constant 0.000000e+00 : f32
    %41 = vector.broadcast %cst_22 : f32 to vector<16x256xf32>
    %42 = arith.cmpf ogt, %40, %41 : vector<16x256xf32>
    %43 = math.exp %40 : vector<16x256xf32>
    %cst_23 = arith.constant 1.000000e+00 : f32
    %44 = vector.broadcast %cst_23 : f32 to vector<16x256xf32>
    %45 = arith.subf %43, %44 : vector<16x256xf32>
    %cst_24 = arith.constant 1.67326319 : f32
    %46 = vector.broadcast %cst_24 : f32 to vector<16x256xf32>
    %47 = arith.mulf %46, %45 : vector<16x256xf32>
    %48 = arith.select %42, %40, %47 : vector<16x256xi1>, vector<16x256xf32>
    %cst_25 = arith.constant 1.05070102 : f32
    %49 = vector.broadcast %cst_25 : f32 to vector<16x256xf32>
    %50 = arith.mulf %49, %48 : vector<16x256xf32>
    %51 = arith.truncf %35 : vector<16x256xf32> to vector<16x256xbf16>
    %c0_26 = arith.constant 0 : index
    %c0_27 = arith.constant 0 : index
    %52 = vector.load %arg6[%c0_26, %c0_27] : memref<512x128xbf16, #tpu.memory_space<vmem>>, vector<256x128xbf16>
    %cst_28 = arith.constant dense<0.000000e+00> : vector<16x128xf32>
    %53 = tpu.matmul %51, %52, %cst_28 {dimension_numbers = #tpu.dot_dimension_numbers<[1], [0], [0], [1], [0, 0, 1, 1], [], []>} : vector<16x256xbf16>, vector<256x128xbf16>, vector<16x128xf32> -> vector<16x128xf32>
    %54 = arith.truncf %50 : vector<16x256xf32> to vector<16x256xbf16>
    %c256_29 = arith.constant 256 : index
    %c0_30 = arith.constant 0 : index
    %55 = vector.load %arg6[%c256_29, %c0_30] : memref<512x128xbf16, #tpu.memory_space<vmem>>, vector<256x128xbf16>
    %cst_31 = arith.constant dense<0.000000e+00> : vector<16x128xf32>
    %56 = tpu.matmul %54, %55, %cst_31 {dimension_numbers = #tpu.dot_dimension_numbers<[1], [0], [0], [1], [0, 0, 1, 1], [], []>} : vector<16x256xbf16>, vector<256x128xbf16>, vector<16x128xf32> -> vector<16x128xf32>
    %57 = arith.addf %53, %56 : vector<16x128xf32>
    %c0_32 = arith.constant 0 : index
    %c0_33 = arith.constant 0 : index
    %58 = vector.load %arg7[%c0_32, %c0_33] : memref<1x128xf32, #tpu.memory_space<vmem>>, vector<1x128xf32>
    %59 = vector.broadcast %58 : vector<1x128xf32> to vector<16x128xf32>
    %60 = arith.addf %57, %59 : vector<16x128xf32>
    %c0_34 = arith.constant 0 : index
    %c0_35 = arith.constant 0 : index
    %61 = vector.load %arg8[%c0_34, %c0_35] : memref<16x128xf32, #tpu.memory_space<vmem>>, vector<16x128xf32>
    tpu.vector_store %arg8[%c0_34, %c0_35], %60 {strides = array<i32>} : memref<16x128xf32, #tpu.memory_space<vmem>>, vector<16x128xf32>,
    return
  }
  func.func @transform_0(%arg0: i32) -> (i32, i32) {
    %c0_i32 = arith.constant 0 : i32
    %c0_i32_0 = arith.constant 0 : i32
    return %arg0, %c0_i32 : i32, i32
  }
  func.func @transform_1(%arg0: i32) -> (i32, i32) {
    %c0_i32 = arith.constant 0 : i32
    %c0_i32_0 = arith.constant 0 : i32
    %c0_i32_1 = arith.constant 0 : i32
    return %c0_i32, %c0_i32_0 : i32, i32
  }
  func.func @transform_2(%arg0: i32) -> (i32, i32) {
    %c0_i32 = arith.constant 0 : i32
    %c0_i32_0 = arith.constant 0 : i32
    %c0_i32_1 = arith.constant 0 : i32
    return %c0_i32, %c0_i32_0 : i32, i32
  }
  func.func @transform_3(%arg0: i32) -> (i32, i32) {
    %c0_i32 = arith.constant 0 : i32
    %c0_i32_0 = arith.constant 0 : i32
    %c0_i32_1 = arith.constant 0 : i32
    return %c0_i32, %c0_i32_0 : i32, i32
  }
  func.func @transform_4(%arg0: i32) -> (i32, i32) {
    %c0_i32 = arith.constant 0 : i32
    %c0_i32_0 = arith.constant 0 : i32
    %c0_i32_1 = arith.constant 0 : i32
    return %c0_i32, %c0_i32_0 : i32, i32
  }
  func.func @transform_5(%arg0: i32) -> (i32, i32) {
    %c0_i32 = arith.constant 0 : i32
    %c0_i32_0 = arith.constant 0 : i32
    %c0_i32_1 = arith.constant 0 : i32
    return %c0_i32, %c0_i32_0 : i32, i32
  }
  func.func @transform_6(%arg0: i32) -> (i32, i32) {
    %c0_i32 = arith.constant 0 : i32
    %c0_i32_0 = arith.constant 0 : i32
    %c0_i32_1 = arith.constant 0 : i32
    return %c0_i32, %c0_i32_0 : i32, i32
  }
  func.func @transform_7(%arg0: i32) -> (i32, i32) {
    %c0_i32 = arith.constant 0 : i32
    %c0_i32_0 = arith.constant 0 : i32
    return %arg0, %c0_i32 : i32, i32
  }
}

</mosaic_0001>

<bundles_post_ra>
// kernel: tpu_custom_call.1
= control target key start
LH: loop header
LB: loop body
LE: loop exit
PB: predicated region body
PF: predicated region fallthrough
CT: control target
= control target key end

     0   :  { %12 = vsyncpa [#allocation3], 0  ;;  %s1867_s0 = inlined_call_operand.vmem [shape: f32[16,4], index: 0, kind: input, shape index: {}]   ;;  %s1868_s1 = inlined_call_operand.vmem [shape: bf16[4,512], index: 1, kind: input, shape index: {}]   ;;  %s1869_s2 = inlined_call_operand.vmem [shape: f32[1,512], index: 2, kind: input, shape index: {}]   ;;  %s1870_s3 = inlined_call_operand.hbm [shape: bf16[256,512], index: 3, kind: input, shape index: {}]   ;;  %s1871_s4 = inlined_call_operand.vmem [shape: f32[1,512], index: 4, kind: input, shape index: {}]   ;;  %s1872_s5 = inlined_call_operand.hbm [shape: bf16[512,128], index: 5, kind: input, shape index: {}]   ;;  %s1873_s6 = inlined_call_operand.vmem [shape: f32[1,128], index: 6, kind: input, shape index: {}]   ;;  %s1874_s7 = inlined_call_operand.hbm [shape: f32[16,128], index: 7, kind: output, shape index: {}]  }
   0x1   :  { %13 = vsyncpa [#allocation6], 0 }
   0x2   :  { %14 = vsyncpa [#allocation4], 0  ;;  %s25_s26 = sshll.u32 %s1870_s3, 4  ;;  %s1737_s27 = smov [#allocation2]   ;;  %s26_s26 = int_to_ptr.hbm [resolvable:$true] %s25_s26 }
   0x3   :  { %s27_s28 = sshll.u32 %s1737_s27, 4  ;;  %s40_s8 = sshll.u32 %s1872_s5, 4  ;;  %s28_s28 = int_to_ptr.vmem [resolvable:$true] %s27_s28  ;;  %s41_s8 = int_to_ptr.hbm [resolvable:$true] %s40_s8 }
   0x4   :  { %s1738_s9 = smov 256   ;;  %s1739_s10 = smov 16  }
   0x5   :  { %33 = dma.hbm_to_vmem [thread:$0]  %s26_s26, 8192, %s28_s28, [#allocation3], %s1738_s9, %s1738_s9, %s1739_s10  }
   0x6   :  { %s1740_s11 = smov [#allocation5]   ;;  %s1741_s13 = smov 64  }
   0x7   :  { %s42_s12 = sshll.u32 %s1740_s11, 4  ;;  %s1742_s14 = smov 4   ;;  %s43_s12 = int_to_ptr.vmem [resolvable:$true] %s42_s12 }
   0x8   :  { %48 = dma.hbm_to_vmem [thread:$0]  %s41_s8, 4096, %s43_s12, [#allocation6], %s1741_s13, %s1741_s13, %s1742_s14  }
   0x9   :  { %1731 = dma.done.wait [#allocation3], 8192  }
   0xa   :  { %1732 = vsyncadd [#allocation3], 4294959104 }
   0xb   :  { %1733 = dma.done.wait [#allocation6], 4096  }
   0xc   :  { %1734 = vsyncadd [#allocation6], 4294963200  ;;  %v63_v0 = vld [vmem:[%s1868_s1] sm:$0xff]  ;;  %v1187_v2 = vld [vmem:[#allocation2 + $0xe0] sm:$0xf]  ;;  %vm84_vm0 = vcmask 1041408  }
   0xd   :  { %75 = vst [vmem:[#allocation1] ss:$4 sm:$0xff] %v63_v0  ;;  %v60_v1 = vld [vmem:[%s1867_s0] sm:$0xff]  ;;  %v1536_v3 = vld [vmem:[#allocation2 + $0xec] sm:$0xf0]  ;;  %v61_v4 = vld [vmem:[%s1867_s0 + $0x8] sm:$0xff] }
   0xe   :  { %v1251_v5 = vld [vmem:[#allocation2 + $0x1e0] sm:$0xf]  ;;  %v1552_v6 = vld [vmem:[#allocation2 + $0x1ec] sm:$0xf0]  ;;  %v1535_v7 = vld [vmem:[#allocation2 + $0xe4] sm:$0xf]  ;;  %v1188_v11 = vor.u32 %v1536_v3, %v1187_v2  ;;  %v62_v22 = vpack.c.bf16 %v61_v4, %v60_v1 }
   0xf   :  { %v1189_v8 = vld [vmem:[#allocation2 + $0xf0] sm:$0xf0]  ;;  %v1551_v9 = vld [vmem:[#allocation2 + $0x1e4] sm:$0xf]  ;;  %v1179_v12 = vld [vmem:[#allocation2 + $0xc0] sm:$0xf]  ;;  %v1252_v18 = vor.u32 %v1552_v6, %v1251_v5 }
  0x10   :  { %v1253_v10 = vld [vmem:[#allocation2 + $0x1f0] sm:$0xf0]  ;;  %v1534_v13 = vld [vmem:[#allocation2 + $0xcc] sm:$0xf0]  ;;  %v1243_v14 = vld [vmem:[#allocation2 + $0x1c0] sm:$0xf]  ;;  %v1192_v27 = vor.u32 %v1535_v7, %v1189_v8 }
  0x11   :  { %v1550_v15 = vld [vmem:[#allocation2 + $0x1cc] sm:$0xf0]  ;;  %vm80_vm1 = vcmask 31744   ;;  %v1256_v25 = vor.u32 %v1551_v9, %v1253_v10  ;;  %v1549_v28 = vld [vmem:[#allocation2 + $0x1c4] sm:$0xf]  ;;  %v1180_v30 = vor.u32 %v1534_v13, %v1179_v12  ;;  %s1743_s23 = smov [#allocation7]  }
  0x12   :  { %v1245_v29 = vld [vmem:[#allocation2 + $0x1d0] sm:$0xf0]  ;;  %v1244_v31 = vor.u32 %v1550_v15, %v1243_v14  ;;  %v1533_v32 = vld [vmem:[#allocation2 + $0xc4] sm:$0xf]  ;;  %v1171_v34 = vld [vmem:[#allocation2 + $0xa0] sm:$0xf] }
  0x13   :  { %v1181_v33 = vld [vmem:[#allocation2 + $0xd0] sm:$0xf0]  ;;  %v1532_v35 = vld [vmem:[#allocation2 + $0xac] sm:$0xf0]  ;;  %v1235_v36 = vld [vmem:[#allocation2 + $0x1a0] sm:$0xf]  ;;  %v1248_v38 = vor.u32 %v1549_v28, %v1245_v29 }
  0x14   :  { %v76_v16 = vld.sshfl [vmem:[#allocation1] sm:$0xff pattern:$0x73625140]  ;;  %v77_v17 = vld.sshfl [vmem:[#allocation1 + $0x8] sm:$0xff pattern:$0x73625140]  ;;  %v1184_v39 = vor.u32 %v1533_v32, %v1181_v33  ;;  %v1172_v42 = vor.u32 %v1532_v35, %v1171_v34 }
  0x15   :  { %v85_v19 = vsel %vm84_vm0, %v76_v16, 0  ;;  %v87_v20 = vsel %vm84_vm0, %v77_v17, 0  ;;  %v78_v21 = vld.sshfl [vmem:[#allocation1 + $0x10] sm:$0xff pattern:$0x73625140]  ;;  %s1101_s24 = sshll.u32 %s1743_s23, 4  ;;  %s1102_s24 = int_to_ptr.vmem [resolvable:$true] %s1101_s24 }
  0x16   :  { %100 = vmatpush.bf16.msra.mxu0 %v85_v19  ;;  %114 = vmatpush.bf16.msra.mxu1 %v87_v20  ;;  %v89_v23 = vsel %vm84_vm0, %v78_v21, 0  ;;  %v79_v24 = vld.sshfl [vmem:[#allocation1 + $0x18] sm:$0xff pattern:$0x73625140]  ;;  %v1547_v40 = vld [vmem:[#allocation2 + $0x1a4] sm:$0xf] }
  0x17   :  { %128 = vmatpush.bf16.msra.mxu2 %v89_v23  ;;  %v91_v26 = vsel %vm84_vm0, %v79_v24, 0  ;;  %v1548_v37 = vld [vmem:[#allocation2 + $0x1ac] sm:$0xf0]  ;;  %v1237_v41 = vld [vmem:[#allocation2 + $0x1b0] sm:$0xf0]  ;;  %s1103_s27 = sshll.u32 %s1874_s7, 4  ;;  %s1104_s27 = int_to_ptr.hbm [resolvable:$true] %s1103_s27 }
  0x18   :  { %142 = vmatpush.bf16.msra.mxu3 %v91_v26  ;;  %v1236_v43 = vor.u32 %v1548_v37, %v1235_v36  ;;  %v1531_v44 = vld [vmem:[#allocation2 + $0xa4] sm:$0xf]  ;;  %v1173_v45 = vld [vmem:[#allocation2 + $0xb0] sm:$0xf0]  ;;  %v1163_v46 = vld [vmem:[#allocation2 + $0x80] sm:$0xf]  ;;  %v1240_v50 = vor.u32 %v1547_v40, %v1237_v41 }
  0x19   :  { %1117 = vmatmul.msk.bf16.vlgmr.msra.gmra.mxu0 %vm80_vm1, %v62_v22  ;;  %1118 = vmatmul.msk.bf16.vlgmr.msra.gmra.mxu1 %vm80_vm1, %v62_v22  ;;  %v1530_v47 = vld [vmem:[#allocation2 + $0x8c] sm:$0xf0]  ;;  %v1227_v48 = vld [vmem:[#allocation2 + $0x180] sm:$0xf]  ;;  %v1176_v51 = vor.u32 %v1531_v44, %v1173_v45  ;;  %v1545_v52 = vld [vmem:[#allocation2 + $0x184] sm:$0xf] }
  0x1a   :  { %407 = vmatpush.bf16.msrb.mxu0 %v1188_v11  ;;  %421 = vmatpush.bf16.msrb.mxu1 %v1252_v18  ;;  %v1546_v49 = vld [vmem:[#allocation2 + $0x18c] sm:$0xf0]  ;;  %v1229_v53 = vld [vmem:[#allocation2 + $0x190] sm:$0xf0]  ;;  %v1164_v54 = vor.u32 %v1530_v47, %v1163_v46  ;;  %v1529_v56 = vld [vmem:[#allocation2 + $0x84] sm:$0xf] }
  0x1b   :  { %1119 = vmatmul.msk.bf16.vlgmr.msra.gmra.mxu2 %vm80_vm1, %v62_v22  ;;  %1120 = vmatmul.msk.bf16.vlgmr.msra.gmra.mxu3 %vm80_vm1, %v62_v22  ;;  %v1228_v55 = vor.u32 %v1546_v49, %v1227_v48  ;;  %v1165_v57 = vld [vmem:[#allocation2 + $0x90] sm:$0xf0]  ;;  %v1232_v58 = vor.u32 %v1545_v52, %v1229_v53  ;;  %v1155_v60 = vld [vmem:[#allocation2 + $0x60] sm:$0xf]  ;;  %v1528_v61 = vld [vmem:[#allocation2 + $0x6c] sm:$0xf0] }
  0x1c   :  { %449 = vmatpush.bf16.msrb.mxu3 %v1256_v25  ;;  %435 = vmatpush.bf16.msrb.mxu2 %v1192_v27  ;;  %v1168_v59 = vor.u32 %v1529_v56, %v1165_v57  ;;  %v1219_v62 = vld [vmem:[#allocation2 + $0x160] sm:$0xf]  ;;  %v1156_v63 = vor.u32 %v1528_v61, %v1155_v60  ;;  %v1544_v0 = vld [vmem:[#allocation2 + $0x16c] sm:$0xf0]  ;;  %v1527_v1 = vld [vmem:[#allocation2 + $0x64] sm:$0xf] }
  0x1d   :  { %v1220_v2 = vor.u32 %v1544_v0, %v1219_v62  ;;  %v1157_v3 = vld [vmem:[#allocation2 + $0x70] sm:$0xf0]  ;;  %v1543_v4 = vld [vmem:[#allocation2 + $0x164] sm:$0xf]  ;;  %v1147_v8 = vld [vmem:[#allocation2 + $0x40] sm:$0xf] }
  0x1e   :  { %408 = vmatpush.bf16.msrb.mxu0 %v1180_v30  ;;  %422 = vmatpush.bf16.msrb.mxu1 %v1244_v31  ;;  %v1221_v5 = vld [vmem:[#allocation2 + $0x170] sm:$0xf0]  ;;  %v1160_v6 = vor.u32 %v1527_v1, %v1157_v3  ;;  %v1526_v9 = vld [vmem:[#allocation2 + $0x4c] sm:$0xf0]  ;;  %v1211_v10 = vld [vmem:[#allocation2 + $0x140] sm:$0xf] }
  0x1f   :  { %v1224_v7 = vor.u32 %v1543_v4, %v1221_v5  ;;  %v1148_v11 = vor.u32 %v1526_v9, %v1147_v8  ;;  %v1542_v12 = vld [vmem:[#allocation2 + $0x14c] sm:$0xf0]  ;;  %v1525_v13 = vld [vmem:[#allocation2 + $0x44] sm:$0xf]  ;;  %v1149_v14 = vld [vmem:[#allocation2 + $0x50] sm:$0xf0] }
  0x20   :  { %450 = vmatpush.bf16.msrb.mxu3 %v1248_v38  ;;  %436 = vmatpush.bf16.msrb.mxu2 %v1184_v39  ;;  %v1212_v15 = vor.u32 %v1542_v12, %v1211_v10  ;;  %v1152_v16 = vor.u32 %v1525_v13, %v1149_v14  ;;  %v1541_v17 = vld [vmem:[#allocation2 + $0x144] sm:$0xf]  ;;  %v1213_v18 = vld [vmem:[#allocation2 + $0x150] sm:$0xf0]  ;;  %v1139_v20 = vld [vmem:[#allocation2 + $0x20] sm:$0xf] }
  0x21   :  { %v1216_v19 = vor.u32 %v1541_v17, %v1213_v18  ;;  %v1524_v21 = vld [vmem:[#allocation2 + $0x2c] sm:$0xf0]  ;;  %v1203_v22 = vld [vmem:[#allocation2 + $0x120] sm:$0xf]  ;;  %v1523_v25 = vld [vmem:[#allocation2 + $0x24] sm:$0xf] }
  0x22   :  { %409 = vmatpush.bf16.msrb.mxu0 %v1172_v42  ;;  %423 = vmatpush.bf16.msrb.mxu1 %v1236_v43  ;;  %v1140_v23 = vor.u32 %v1524_v21, %v1139_v20  ;;  %v1540_v24 = vld [vmem:[#allocation2 + $0x12c] sm:$0xf0]  ;;  %v1141_v26 = vld [vmem:[#allocation2 + $0x30] sm:$0xf0]  ;;  %v1539_v29 = vld [vmem:[#allocation2 + $0x124] sm:$0xf] }
  0x23   :  { %v1204_v27 = vor.u32 %v1540_v24, %v1203_v22  ;;  %v1144_v28 = vor.u32 %v1523_v25, %v1141_v26  ;;  %v1205_v30 = vld [vmem:[#allocation2 + $0x130] sm:$0xf0]  ;;  %v1131_v32 = vld [vmem:[#allocation2] sm:$0xf]  ;;  %v1522_v33 = vld [vmem:[#allocation2 + $0xc] sm:$0xf0] }
  0x24   :  { %451 = vmatpush.bf16.msrb.mxu3 %v1240_v50  ;;  %437 = vmatpush.bf16.msrb.mxu2 %v1176_v51  ;;  %v1208_v31 = vor.u32 %v1539_v29, %v1205_v30  ;;  %v1195_v34 = vld [vmem:[#allocation2 + $0x100] sm:$0xf]  ;;  %v1132_v35 = vor.u32 %v1522_v33, %v1131_v32  ;;  %v1538_v36 = vld [vmem:[#allocation2 + $0x10c] sm:$0xf0]  ;;  %v1521_v37 = vld [vmem:[#allocation2 + $0x4] sm:$0xf] }
  0x25   :  { %v1133_v38 = vld [vmem:[#allocation2 + $0x10] sm:$0xf0]  ;;  %v1196_v39 = vor.u32 %v1538_v36, %v1195_v34  ;;  %v1537_v41 = vld [vmem:[#allocation2 + $0x104] sm:$0xf]  ;;  %v1319_v43 = vld [vmem:[#allocation2 + $0xe8] sm:$0xf] }
  0x26   :  { %410 = vmatpush.bf16.msrb.mxu0 %v1164_v54  ;;  %424 = vmatpush.bf16.msrb.mxu1 %v1228_v55  ;;  %v1136_v40 = vor.u32 %v1521_v37, %v1133_v38  ;;  %v1197_v42 = vld [vmem:[#allocation2 + $0x110] sm:$0xf0]  ;;  %v1568_v45 = vld [vmem:[#allocation2 + $0xf4] sm:$0xf0]  ;;  %v1383_v46 = vld [vmem:[#allocation2 + $0x1e8] sm:$0xf] }
  0x27   :  { %v1200_v44 = vor.u32 %v1537_v41, %v1197_v42  ;;  %v1584_v47 = vld [vmem:[#allocation2 + $0x1f4] sm:$0xf0]  ;;  %v1320_v48 = vor.u32 %v1568_v45, %v1319_v43  ;;  %v1567_v50 = vld [vmem:[#allocation2 + $0xec] sm:$0xf]  ;;  %v1321_v51 = vld [vmem:[#allocation2 + $0xf8] sm:$0xf0] }
  0x28   :  { %452 = vmatpush.bf16.msrb.mxu3 %v1232_v58  ;;  %438 = vmatpush.bf16.msrb.mxu2 %v1168_v59  ;;  %v1384_v49 = vor.u32 %v1584_v47, %v1383_v46  ;;  %v1583_v52 = vld [vmem:[#allocation2 + $0x1ec] sm:$0xf]  ;;  %v1324_v53 = vor.u32 %v1567_v50, %v1321_v51  ;;  %v1385_v54 = vld [vmem:[#allocation2 + $0x1f8] sm:$0xf0]  ;;  %v1311_v55 = vld [vmem:[#allocation2 + $0xc8] sm:$0xf] }
  0x29   :  { %v1566_v56 = vld [vmem:[#allocation2 + $0xd4] sm:$0xf0]  ;;  %v1388_v57 = vor.u32 %v1583_v52, %v1385_v54  ;;  %v1375_v59 = vld [vmem:[#allocation2 + $0x1c8] sm:$0xf]  ;;  %v1565_v61 = vld [vmem:[#allocation2 + $0xcc] sm:$0xf] }
  0x2a   :  { %411 = vmatpush.bf16.msrb.mxu0 %v1156_v63  ;;  %425 = vmatpush.bf16.msrb.mxu1 %v1220_v2  ;;  %v1312_v58 = vor.u32 %v1566_v56, %v1311_v55  ;;  %v1582_v60 = vld [vmem:[#allocation2 + $0x1d4] sm:$0xf0]  ;;  %v1313_v63 = vld [vmem:[#allocation2 + $0xd8] sm:$0xf0]  ;;  %v1581_v0 = vld [vmem:[#allocation2 + $0x1cc] sm:$0xf] }
  0x2b   :  { %v1376_v62 = vor.u32 %v1582_v60, %v1375_v59  ;;  %v1377_v1 = vld [vmem:[#allocation2 + $0x1d8] sm:$0xf0]  ;;  %v1316_v2 = vor.u32 %v1565_v61, %v1313_v63  ;;  %v1303_v4 = vld [vmem:[#allocation2 + $0xa8] sm:$0xf]  ;;  %v1564_v5 = vld [vmem:[#allocation2 + $0xb4] sm:$0xf0] }
  0x2c   :  { %439 = vmatpush.bf16.msrb.mxu2 %v1160_v6  ;;  %453 = vmatpush.bf16.msrb.mxu3 %v1224_v7  ;;  %v1380_v3 = vor.u32 %v1581_v0, %v1377_v1  ;;  %v1367_v6 = vld [vmem:[#allocation2 + $0x1a8] sm:$0xf]  ;;  %v1304_v7 = vor.u32 %v1564_v5, %v1303_v4  ;;  %v1580_v8 = vld [vmem:[#allocation2 + $0x1b4] sm:$0xf0]  ;;  %v1563_v9 = vld [vmem:[#allocation2 + $0xac] sm:$0xf] }
  0x2d   :  { %v1305_v10 = vld [vmem:[#allocation2 + $0xb8] sm:$0xf0]  ;;  %v1579_v13 = vld [vmem:[#allocation2 + $0x1ac] sm:$0xf]  ;;  %v1295_v17 = vld [vmem:[#allocation2 + $0x88] sm:$0xf] }
  0x2e   :  { %412 = vmatpush.bf16.msrb.mxu0 %v1148_v11  ;;  %426 = vmatpush.bf16.msrb.mxu1 %v1212_v15  ;;  %v1368_v11 = vor.u32 %v1580_v8, %v1367_v6  ;;  %v1308_v12 = vor.u32 %v1563_v9, %v1305_v10  ;;  %v1369_v14 = vld [vmem:[#allocation2 + $0x1b8] sm:$0xf0]  ;;  %v1812_v15 = vld [vmem:[%s1869_s2] sm:$0xf]  ;;  %v1561_v22 = vld [vmem:[#allocation2 + $0x8c] sm:$0xf] }
  0x2f   :  { %v1562_v18 = vld [vmem:[#allocation2 + $0x94] sm:$0xf0]  ;;  %v1577_v26 = vld [vmem:[#allocation2 + $0x18c] sm:$0xf]  ;;  %v67_v29 = vperm.slane %v1812_v15, 1  ;;  %s1745_s28 = smov 8  }
  0x30   :  { %440 = vmatpush.bf16.msrb.mxu2 %v1152_v16  ;;  %454 = vmatpush.bf16.msrb.mxu3 %v1216_v19  ;;  %v1372_v16 = vor.u32 %v1579_v13, %v1369_v14  ;;  %v1359_v19 = vld [vmem:[#allocation2 + $0x188] sm:$0xf]  ;;  %v1296_v20 = vor.u32 %v1562_v18, %v1295_v17  ;;  %v1578_v21 = vld [vmem:[#allocation2 + $0x194] sm:$0xf0]  ;;  %v1559_v36 = vld [vmem:[#allocation2 + $0x6c] sm:$0xf] }
  0x31   :  { %v1360_v24 = vor.u32 %v1578_v21, %v1359_v19  ;;  %v1560_v32 = vld [vmem:[#allocation2 + $0x74] sm:$0xf0]  ;;  %v1351_v33 = vld [vmem:[#allocation2 + $0x168] sm:$0xf]  ;;  %v1289_v37 = vld [vmem:[#allocation2 + $0x78] sm:$0xf0] }
  0x32   :  { %413 = vmatpush.bf16.msrb.mxu0 %v1140_v23  ;;  %427 = vmatpush.bf16.msrb.mxu1 %v1204_v27  ;;  %v1297_v23 = vld [vmem:[#allocation2 + $0x98] sm:$0xf0]  ;;  %v1279_v47 = vld [vmem:[#allocation2 + $0x48] sm:$0xf]  ;;  %v1574_v51 = vld [vmem:[#allocation2 + $0x154] sm:$0xf0] }
  0x33   :  { %v1300_v25 = vor.u32 %v1561_v22, %v1297_v23  ;;  %v1361_v27 = vld [vmem:[#allocation2 + $0x198] sm:$0xf0]  ;;  %v1557_v52 = vld [vmem:[#allocation2 + $0x4c] sm:$0xf]  ;;  %v1271_v60 = vld [vmem:[#allocation2 + $0x28] sm:$0xf] }
  0x34   :  { %441 = vmatpush.bf16.msrb.mxu2 %v1144_v28  ;;  %455 = vmatpush.bf16.msrb.mxu3 %v1208_v31  ;;  %v66_v28 = vperm.slane %v1812_v15, 0  ;;  %v1364_v30 = vor.u32 %v1577_v26, %v1361_v27  ;;  %v1287_v31 = vld [vmem:[#allocation2 + $0x68] sm:$0xf]  ;;  %v1353_v41 = vld [vmem:[#allocation2 + $0x178] sm:$0xf0]  ;;  %v68_v21 = vperm.slane %v1812_v15, 2 }
  0x35   :  { %v1288_v34 = vor.u32 %v1560_v32, %v1287_v31  ;;  %v1345_v59 = vld [vmem:[#allocation2 + $0x158] sm:$0xf0]  ;;  %v1335_v63 = vld [vmem:[#allocation2 + $0x128] sm:$0xf]  ;;  %v1572_v0 = vld [vmem:[#allocation2 + $0x134] sm:$0xf0] }
  0x36   :  { %414 = vmatpush.bf16.msrb.mxu0 %v1132_v35  ;;  %428 = vmatpush.bf16.msrb.mxu1 %v1196_v39  ;;  %v1576_v35 = vld [vmem:[#allocation2 + $0x174] sm:$0xf0]  ;;  %v1292_v39 = vor.u32 %v1559_v36, %v1289_v37  ;;  %v1273_v4 = vld [vmem:[#allocation2 + $0x38] sm:$0xf0]  ;;  %v1571_v5 = vld [vmem:[#allocation2 + $0x12c] sm:$0xf] }
  0x37   :  { %v1352_v38 = vor.u32 %v1576_v35, %v1351_v33  ;;  %v1337_v8 = vld [vmem:[#allocation2 + $0x138] sm:$0xf0]  ;;  %v1263_v9 = vld [vmem:[#allocation2 + $0x8] sm:$0xf]  ;;  %v1554_v10 = vld [vmem:[#allocation2 + $0x14] sm:$0xf0] }
  0x38   :  { %442 = vmatpush.bf16.msrb.mxu2 %v1136_v40  ;;  %456 = vmatpush.bf16.msrb.mxu3 %v1200_v44  ;;  %v1575_v40 = vld [vmem:[#allocation2 + $0x16c] sm:$0xf]  ;;  %v1340_v13 = vor.u32 %v1571_v5, %v1337_v8  ;;  %v1327_v14 = vld [vmem:[#allocation2 + $0x108] sm:$0xf]  ;;  %v1264_v23 = vor.u32 %v1554_v10, %v1263_v9  ;;  %v1329_v26 = vld [vmem:[#allocation2 + $0x118] sm:$0xf0] }
  0x39   :  { %v1356_v44 = vor.u32 %v1575_v40, %v1353_v41  ;;  %v1553_v17 = vld [vmem:[#allocation2 + $0xc] sm:$0xf]  ;;  %v69_v27 = vperm.slane %v1812_v15, 3 }
  0x3a   :  { %689 = vmatpush.bf16.msra.mxu0 %v1320_v48  ;;  %703 = vmatpush.bf16.msra.mxu1 %v1384_v49  ;;  %v1558_v48 = vld [vmem:[#allocation2 + $0x54] sm:$0xf0]  ;;  %v1343_v49 = vld [vmem:[#allocation2 + $0x148] sm:$0xf] }
  0x3b   :  { %v1280_v50 = vor.u32 %v1558_v48, %v1279_v47  ;;  %v1344_v56 = vor.u32 %v1574_v51, %v1343_v49 }
  0x3c   :  { %717 = vmatpush.bf16.msra.mxu2 %v1324_v53  ;;  %731 = vmatpush.bf16.msra.mxu3 %v1388_v57  ;;  %v1281_v53 = vld [vmem:[#allocation2 + $0x58] sm:$0xf0] }
  0x3d   :  { %v1284_v57 = vor.u32 %v1557_v52, %v1281_v53 }
  0x3e   :  { %690 = vmatpush.bf16.msra.mxu0 %v1312_v58  ;;  %704 = vmatpush.bf16.msra.mxu1 %v1376_v62  ;;  %v1573_v58 = vld [vmem:[#allocation2 + $0x14c] sm:$0xf]  ;;  %v1556_v62 = vld [vmem:[#allocation2 + $0x34] sm:$0xf0] }
  0x3f   :  { %v1348_v61 = vor.u32 %v1573_v58, %v1345_v59  ;;  %v1272_v1 = vor.u32 %v1556_v62, %v1271_v60 }
  0x40   :  { %718 = vmatpush.bf16.msra.mxu2 %v1316_v2  ;;  %732 = vmatpush.bf16.msra.mxu3 %v1380_v3  ;;  %v1336_v2 = vor.u32 %v1572_v0, %v1335_v63  ;;  %v1555_v3 = vld [vmem:[#allocation2 + $0x2c] sm:$0xf] }
  0x42   :  { %691 = vmatpush.bf16.msra.mxu0 %v1304_v7  ;;  %705 = vmatpush.bf16.msra.mxu1 %v1368_v11  ;;  %v1276_v7 = vor.u32 %v1555_v3, %v1273_v4 }
  0x44   :  { %719 = vmatpush.bf16.msra.mxu2 %v1308_v12  ;;  %733 = vmatpush.bf16.msra.mxu3 %v1372_v16  ;;  %v1570_v16 = vld [vmem:[#allocation2 + $0x114] sm:$0xf0] }
  0x46   :  { %692 = vmatpush.bf16.msra.mxu0 %v1296_v20  ;;  %706 = vmatpush.bf16.msra.mxu1 %v1360_v24  ;;  %v1265_v20 = vld [vmem:[#allocation2 + $0x18] sm:$0xf0]  ;;  %v1328_v24 = vor.u32 %v1570_v16, %v1327_v14 }
  0x47   :  { %v1268_v31 = vor.u32 %v1553_v17, %v1265_v20 }
  0x48   :  { %720 = vmatpush.bf16.msra.mxu2 %v1300_v25  ;;  %734 = vmatpush.bf16.msra.mxu3 %v1364_v30  ;;  %v1569_v25 = vld [vmem:[#allocation2 + $0x10c] sm:$0xf] }
  0x4a   :  { %693 = vmatpush.bf16.msra.mxu0 %v1288_v34  ;;  %707 = vmatpush.bf16.msra.mxu1 %v1352_v38  ;;  %v1332_v34 = vor.u32 %v1569_v25, %v1329_v26  ;;  %v1590_v25 = vld [vmem:[#allocation5 + $0x28] sm:$0xff]  ;;  %v1599_v26 = vld [vmem:[#allocation5 + $0x70] sm:$0xff] }
  0x4c   :  { %721 = vmatpush.bf16.msra.mxu2 %v1292_v39  ;;  %735 = vmatpush.bf16.msra.mxu3 %v1356_v44 }
  0x4e   :  { %694 = vmatpush.bf16.msra.mxu0 %v1280_v50  ;;  %708 = vmatpush.bf16.msra.mxu1 %v1344_v56 }
  0x50   :  { %722 = vmatpush.bf16.msra.mxu2 %v1284_v57  ;;  %736 = vmatpush.bf16.msra.mxu3 %v1348_v61 }
  0x52   :  { %695 = vmatpush.bf16.msra.mxu0 %v1272_v1  ;;  %709 = vmatpush.bf16.msra.mxu1 %v1336_v2 }
  0x54   :  { %723 = vmatpush.bf16.msra.mxu2 %v1276_v7  ;;  %737 = vmatpush.bf16.msra.mxu3 %v1340_v13 }
  0x56   :  { %696 = vmatpush.bf16.msra.mxu0 %v1264_v23  ;;  %710 = vmatpush.bf16.msra.mxu1 %v1328_v24  ;;  %v1591_v23 = vld [vmem:[#allocation5 + $0x30] sm:$0xff]  ;;  %v1600_v24 = vld [vmem:[#allocation5 + $0x78] sm:$0xff] }
  0x58   :  { %724 = vmatpush.bf16.msra.mxu2 %v1268_v31  ;;  %738 = vmatpush.bf16.msra.mxu3 %v1332_v34  ;;  %v1608_v31 = vld [vmem:[#allocation5 + $0xb8] sm:$0xff]  ;;  %v1587_v34 = vld [vmem:[#allocation5 + $0x10] sm:$0xff] }
  0x96   :  { %v102_v42 = vpop.f32.mrf.mxu0  ;;  %v116_v43 = vpop.f32.mrf.mxu1 }
  0x97   :  { %v1818_v45 = vadd.f32 %v102_v42, %v66_v28  ;;  %v1822_v46 = vadd.f32 %v116_v43, %v67_v29 }
  0x99   :  { %v157_v54 = vmul.f32 1.442695, %v1818_v45  ;;  %v159_v55 = vmul.f32 1.442695, %v1822_v46  ;;  %vm149_vm2 = vcmp.gt.f32.partialorder %v1818_v45, 0.0  ;;  %vm150_vm3 = vcmp.gt.f32.partialorder %v1822_v46, 0.0 }
  0x9b   :  { %1627 = vpow2.f32 %v157_v54 }
  0x9c   :  { %1629 = vpow2.f32 %v159_v55 }
  0x9e   :  { %v130_v6 = vpop.f32.mrf.mxu2  ;;  %v144_v11 = vpop.f32.mrf.mxu3 }
  0x9f   :  { %v104_v12 = vpop.f32.mrf.mxu0  ;;  %v118_v19 = vpop.f32.mrf.mxu1  ;;  %v1832_v35 = vadd.f32 %v130_v6, %v68_v21  ;;  %v1834_v36 = vadd.f32 %v144_v11, %v69_v27 }
  0xa0   :  { %v105_v18 = vadd.f32 %v104_v12, %v66_v28  ;;  %v119_v22 = vadd.f32 %v118_v19, %v67_v29 }
  0xa1   :  { %v1628_v32 = vpop.eup %1627  ;;  %v161_v41 = vmul.f32 1.442695, %v1832_v35  ;;  %v163_v44 = vmul.f32 1.442695, %v1834_v36  ;;  %vm152_vm7 = vcmp.gt.f32.partialorder %v1834_v36, 0.0  ;;  %vm151_vm9 = vcmp.gt.f32.partialorder %v1832_v35, 0.0 }
  0xa2   :  { %v165_v30 = vmul.f32 1.442695, %v105_v18  ;;  %v167_v28 = vmul.f32 1.442695, %v119_v22  ;;  %v1630_v33 = vpop.eup %1629  ;;  %v1121_v29 = vadd.f32 -1.0, %v1628_v32  ;;  %vm153_vm4 = vcmp.gt.f32.partialorder %v105_v18, 0.0 }
  0xa3   :  { %v1122_v15 = vadd.f32 -1.0, %v1630_v33  ;;  %vm154_vm5 = vcmp.gt.f32.partialorder %v119_v22, 0.0  ;;  %v1588_v32 = vld [vmem:[#allocation5 + $0x18] sm:$0xff]  ;;  %v1607_v33 = vld [vmem:[#allocation5 + $0xb0] sm:$0xff] }
  0xa4   :  { %1631 = vpow2.f32 %v165_v30  ;;  %v181_v43 = vmul.f32 1.6732632, %v1121_v29  ;;  %v1598_v30 = vld [vmem:[#allocation5 + $0x68] sm:$0xff]  ;;  %v1596_v29 = vld [vmem:[#allocation5 + $0x58] sm:$0xff] }
  0xa5   :  { %1633 = vpow2.f32 %v167_v28  ;;  %v182_v49 = vmul.f32 1.6732632, %v1122_v15  ;;  %v1597_v28 = vld [vmem:[#allocation5 + $0x60] sm:$0xff]  ;;  %v1615_v15 = vld [vmem:[#allocation5 + $0xf0] sm:$0xff] }
  0xa6   :  { %v132_v37 = vpop.f32.mrf.mxu2  ;;  %v146_v39 = vpop.f32.mrf.mxu3  ;;  %v189_v53 = vsel %vm149_vm2, %v1818_v45, %v181_v43  ;;  %v1614_v43 = vld [vmem:[#allocation5 + $0xe8] sm:$0xff] }
  0xa7   :  { %v133_v38 = vadd.f32 %v132_v37, %v68_v21  ;;  %v147_v40 = vadd.f32 %v146_v39, %v69_v27  ;;  %v190_v55 = vsel %vm150_vm3, %v1822_v46, %v182_v49  ;;  %v197_v59 = vmul.f32 1.050701, %v189_v53  ;;  %v1589_v27 = vld [vmem:[#allocation5 + $0x20] sm:$0xff]  ;;  %v1586_v37 = vld [vmem:[#allocation5 + $0x8] sm:$0xff]  ;;  %v241_v39 = vld [vmem:[%s1871_s4] sm:$0x3] }
  0xa8   :  { %v198_v63 = vmul.f32 1.050701, %v190_v55  ;;  %v1603_v55 = vld [vmem:[#allocation5 + $0x90] sm:$0xff] }
  0xa9   :  { %v169_v42 = vmul.f32 1.442695, %v133_v38  ;;  %v171_v47 = vmul.f32 1.442695, %v147_v40  ;;  %vm155_vm6 = vcmp.gt.f32.partialorder %v133_v38, 0.0  ;;  %vm156_vm8 = vcmp.gt.f32.partialorder %v147_v40, 0.0 }
  0xaa   :  { %v1632_v48 = vpop.eup %1631 }
  0xab   :  { %1635 = vpow2.f32 %v169_v42  ;;  %v1634_v50 = vpop.eup %1633  ;;  %v1125_v51 = vadd.f32 -1.0, %v1632_v48  ;;  %v243_v42 = vperm.slane %v241_v39, 0 }
  0xac   :  { %1637 = vpow2.f32 %v171_v47  ;;  %v1126_v52 = vadd.f32 -1.0, %v1634_v50  ;;  %v1604_v47 = vld [vmem:[#allocation5 + $0x98] sm:$0xff] }
  0xad   :  { %1639 = vpow2.f32 %v161_v41  ;;  %v185_v54 = vmul.f32 1.6732632, %v1125_v51  ;;  %v1585_v41 = vld [vmem:[#allocation5] sm:$0xff] }
  0xae   :  { %1641 = vpow2.f32 %v163_v44  ;;  %v186_v56 = vmul.f32 1.6732632, %v1126_v52  ;;  %v1594_v44 = vld [vmem:[#allocation5 + $0x48] sm:$0xff]  ;;  %v1613_v51 = vld [vmem:[#allocation5 + $0xe0] sm:$0xff] }
  0xaf   :  { %v193_v57 = vsel %vm153_vm4, %v105_v18, %v185_v54  ;;  %v1593_v52 = vld [vmem:[#allocation5 + $0x40] sm:$0xff]  ;;  %v244_v54 = vperm.slane %v241_v39, 1 }
  0xb0   :  { %v201_v60 = vmul.f32 1.050701, %v193_v57  ;;  %v194_v61 = vsel %vm154_vm5, %v119_v22, %v186_v56  ;;  %v1592_v22 = vld [vmem:[#allocation5 + $0x38] sm:$0xff] }
  0xb1   :  { %v1636_v58 = vpop.eup %1635  ;;  %v202_v0 = vmul.f32 1.050701, %v194_v61  ;;  %v1612_v57 = vld [vmem:[#allocation5 + $0xd8] sm:$0xff]  ;;  %v1602_v61 = vld [vmem:[#allocation5 + $0x88] sm:$0xff] }
  0xb2   :  { %v1638_v62 = vpop.eup %1637  ;;  %v205_v2 = vpack.c.bf16 %v201_v60, %v197_v59  ;;  %v1127_v3 = vadd.f32 -1.0, %v1636_v58 }
  0xb3   :  { %v1640_v1 = vpop.eup %1639  ;;  %v206_v4 = vpack.c.bf16 %v202_v0, %v198_v63  ;;  %v1128_v5 = vadd.f32 -1.0, %v1638_v62 }
  0xb4   :  { %v1642_v45 = vpop.eup %1641  ;;  %415 = vmatmul.bf16.vlgmr.msrb.gmra.mxu0 %v205_v2  ;;  %443 = vmatmul.bf16.vlgmr.msrb.gmra.mxu2 %v205_v2  ;;  %v1123_v46 = vadd.f32 -1.0, %v1640_v1  ;;  %v187_v7 = vmul.f32 1.6732632, %v1127_v3  ;;  %v1611_v2 = vld [vmem:[#allocation5 + $0xd0] sm:$0xff] }
  0xb5   :  { %429 = vmatmul.bf16.vlgmr.msrb.gmra.mxu1 %v206_v4  ;;  %457 = vmatmul.bf16.vlgmr.msrb.gmra.mxu3 %v206_v4  ;;  %v1124_v6 = vadd.f32 -1.0, %v1642_v45  ;;  %v188_v8 = vmul.f32 1.6732632, %v1128_v5  ;;  %v1854_v45 = vld [vmem:[%s1871_s4 + $0x2] sm:$0x3]  ;;  %v1601_v5 = vld [vmem:[#allocation5 + $0x80] sm:$0xff] }
  0xb6   :  { %v183_v9 = vmul.f32 1.6732632, %v1123_v46  ;;  %v195_v11 = vsel %vm155_vm6, %v133_v38, %v187_v7  ;;  %1061 = vmatpush.bf16.msrb.mxu2 %v1592_v22  ;;  %1075 = vmatpush.bf16.msrb.mxu3 %v1600_v24  ;;  %v1595_v38 = vld [vmem:[#allocation5 + $0x50] sm:$0xff]  ;;  %v525_v7 = vperm.slane %v1854_v45, 0  ;;  %v526_v22 = vperm.slane %v1854_v45, 1 }
  0xb7   :  { %v184_v10 = vmul.f32 1.6732632, %v1124_v6  ;;  %v196_v12 = vsel %vm156_vm8, %v147_v40, %v188_v8  ;;  %v203_v16 = vmul.f32 1.050701, %v195_v11  ;;  %937 = vmatpush.bf16.msrb.mxu0 %v1608_v31  ;;  %v1605_v40 = vld [vmem:[#allocation5 + $0xa0] sm:$0xff]  ;;  %v1610_v8 = vld [vmem:[#allocation5 + $0xc8] sm:$0xff] }
  0xb8   :  { %v191_v13 = vsel %vm151_vm9, %v1832_v35, %v183_v9  ;;  %v204_v17 = vmul.f32 1.050701, %v196_v12  ;;  %v1616_v35 = vld [vmem:[#allocation5 + $0xf8] sm:$0xff] }
  0xb9   :  { %v192_v14 = vsel %vm152_vm7, %v1834_v36, %v184_v10  ;;  %v199_v18 = vmul.f32 1.050701, %v191_v13  ;;  %951 = vmatpush.bf16.msrb.mxu1 %v1616_v35  ;;  %v1606_v36 = vld [vmem:[#allocation5 + $0xa8] sm:$0xff] }
  0xba   :  { %v200_v19 = vmul.f32 1.050701, %v192_v14  ;;  %1062 = vmatpush.bf16.msrb.mxu2 %v1591_v23  ;;  %1076 = vmatpush.bf16.msrb.mxu3 %v1599_v26 }
  0xbb   :  { %v207_v20 = vpack.c.bf16 %v203_v16, %v199_v18  ;;  %938 = vmatpush.bf16.msrb.mxu0 %v1607_v33  ;;  %v1609_v18 = vld [vmem:[#allocation5 + $0xc0] sm:$0xff] }
  0xbc   :  { %v208_v21 = vpack.c.bf16 %v204_v17, %v200_v19 }
  0xbd   :  { %952 = vmatpush.bf16.msrb.mxu1 %v1615_v15 }
  0xbe   :  { %1063 = vmatpush.bf16.msrb.mxu2 %v1590_v25  ;;  %1077 = vmatpush.bf16.msrb.mxu3 %v1598_v30 }
  0xbf   :  { %939 = vmatpush.bf16.msrb.mxu0 %v1606_v36 }
  0xc1   :  { %953 = vmatpush.bf16.msrb.mxu1 %v1614_v43 }
  0xc2   :  { %1064 = vmatpush.bf16.msrb.mxu2 %v1589_v27  ;;  %1078 = vmatpush.bf16.msrb.mxu3 %v1597_v28 }
  0xc3   :  { %940 = vmatpush.bf16.msrb.mxu0 %v1605_v40 }
  0xc4   :  { %697 = vmatmul.bf16.vlgmr.msra.gmra.mxu0 %v207_v20  ;;  %725 = vmatmul.bf16.vlgmr.msra.gmra.mxu2 %v207_v20 }
  0xc5   :  { %711 = vmatmul.bf16.vlgmr.msra.gmra.mxu1 %v208_v21  ;;  %739 = vmatmul.bf16.vlgmr.msra.gmra.mxu3 %v208_v21 }
  0xc6   :  { %1065 = vmatpush.bf16.msrb.mxu2 %v1588_v32  ;;  %1079 = vmatpush.bf16.msrb.mxu3 %v1596_v29 }
  0xc7   :  { %941 = vmatpush.bf16.msrb.mxu0 %v1604_v47  ;;  %954 = vmatpush.bf16.msrb.mxu1 %v1613_v51 }
  0xca   :  { %1066 = vmatpush.bf16.msrb.mxu2 %v1587_v34  ;;  %1080 = vmatpush.bf16.msrb.mxu3 %v1595_v38 }
  0xcb   :  { %942 = vmatpush.bf16.msrb.mxu0 %v1603_v55  ;;  %955 = vmatpush.bf16.msrb.mxu1 %v1612_v57 }
  0xce   :  { %1067 = vmatpush.bf16.msrb.mxu2 %v1586_v37  ;;  %1081 = vmatpush.bf16.msrb.mxu3 %v1594_v44 }
  0xcf   :  { %943 = vmatpush.bf16.msrb.mxu0 %v1602_v61  ;;  %956 = vmatpush.bf16.msrb.mxu1 %v1611_v2 }
  0xd2   :  { %1068 = vmatpush.bf16.msrb.mxu2 %v1585_v41  ;;  %1082 = vmatpush.bf16.msrb.mxu3 %v1593_v52 }
  0xd3   :  { %944 = vmatpush.bf16.msrb.mxu0 %v1601_v5  ;;  %957 = vmatpush.bf16.msrb.mxu1 %v1610_v8 }
  0xd7   :  { %958 = vmatpush.bf16.msrb.mxu1 %v1609_v18 }
 0x131   :  { %v416_v48 = vpop.f32.mrf.mxu0 }
 0x132   :  { %v417_v49 = vadd.f32 %v416_v48, %v243_v42  ;;  %v430_v50 = vpop.f32.mrf.mxu1 }
 0x134   :  { %v431_v53 = vadd.f32 %v430_v50, %v417_v49 }
 0x136   :  { %v467_v56 = vmul.f32 1.442695, %v431_v53  ;;  %vm463_vm10 = vcmp.gt.f32.partialorder %v431_v53, 0.0 }
 0x137   :  { %v444_v58 = vpop.f32.mrf.mxu2 }
 0x138   :  { %1643 = vpow2.f32 %v467_v56  ;;  %v445_v59 = vadd.f32 %v444_v58, %v244_v54  ;;  %v458_v60 = vpop.f32.mrf.mxu3 }
 0x139   :  { %v418_v62 = vpop.f32.mrf.mxu0 }
 0x13a   :  { %v1849_v63 = vadd.f32 %v458_v60, %v445_v59  ;;  %v419_v0 = vadd.f32 %v418_v62, %v243_v42  ;;  %v432_v1 = vpop.f32.mrf.mxu1 }
 0x13c   :  { %v469_v3 = vmul.f32 1.442695, %v1849_v63  ;;  %v433_v4 = vadd.f32 %v432_v1, %v419_v0  ;;  %vm464_vm12 = vcmp.gt.f32.partialorder %v1849_v63, 0.0 }
 0x13e   :  { %v1644_v46 = vpop.eup %1643  ;;  %1645 = vpow2.f32 %v469_v3  ;;  %v471_v6 = vmul.f32 1.442695, %v433_v4  ;;  %vm465_vm11 = vcmp.gt.f32.partialorder %v433_v4, 0.0 }
 0x13f   :  { %v446_v9 = vpop.f32.mrf.mxu2  ;;  %v1257_v12 = vadd.f32 -1.0, %v1644_v46 }
 0x140   :  { %1647 = vpow2.f32 %v471_v6  ;;  %v447_v10 = vadd.f32 %v446_v9, %v244_v54  ;;  %v460_v11 = vpop.f32.mrf.mxu3 }
 0x141   :  { %v698_v13 = vpop.f32.mrf.mxu0  ;;  %v479_v23 = vmul.f32 1.6732632, %v1257_v12 }
 0x142   :  { %v461_v14 = vadd.f32 %v460_v11, %v447_v10  ;;  %v699_v16 = vadd.f32 %v698_v13, %v525_v7  ;;  %v712_v17 = vpop.f32.mrf.mxu1 }
 0x143   :  { %v483_v28 = vsel %vm463_vm10, %v431_v53, %v479_v23 }
 0x144   :  { %v1646_v19 = vpop.eup %1645  ;;  %v473_v20 = vmul.f32 1.442695, %v461_v14  ;;  %v713_v21 = vadd.f32 %v712_v17, %v699_v16  ;;  %v487_v39 = vmul.f32 1.050701, %v483_v28  ;;  %vm466_vm13 = vcmp.gt.f32.partialorder %v461_v14, 0.0 }
 0x145   :  { %v1258_v26 = vadd.f32 -1.0, %v1646_v19 }
 0x146   :  { %v1648_v24 = vpop.eup %1647  ;;  %1649 = vpow2.f32 %v473_v20  ;;  %v749_v25 = vmul.f32 1.442695, %v713_v21  ;;  %vm745_vm14 = vcmp.gt.f32.partialorder %v713_v21, 0.0 }
 0x147   :  { %v1259_v27 = vadd.f32 -1.0, %v1648_v24  ;;  %v726_v30 = vpop.f32.mrf.mxu2  ;;  %v480_v36 = vmul.f32 1.6732632, %v1258_v26 }
 0x148   :  { %1651 = vpow2.f32 %v749_v25  ;;  %v727_v31 = vadd.f32 %v726_v30, %v526_v22  ;;  %v740_v32 = vpop.f32.mrf.mxu3 }
 0x149   :  { %v481_v33 = vmul.f32 1.6732632, %v1259_v27  ;;  %v700_v34 = vpop.f32.mrf.mxu0  ;;  %v484_v49 = vsel %vm464_vm12, %v1849_v63, %v480_v36 }
 0x14a   :  { %v741_v35 = vadd.f32 %v740_v32, %v727_v31  ;;  %v701_v29 = vadd.f32 %v700_v34, %v525_v7  ;;  %v714_v15 = vpop.f32.mrf.mxu1  ;;  %v488_v56 = vmul.f32 1.050701, %v484_v49 }
 0x14b   :  { %v485_v37 = vsel %vm465_vm11, %v433_v4, %v481_v33 }
 0x14c   :  { %v1650_v38 = vpop.eup %1649  ;;  %v489_v40 = vmul.f32 1.050701, %v485_v37  ;;  %v751_v41 = vmul.f32 1.442695, %v741_v35  ;;  %v715_v42 = vadd.f32 %v714_v15, %v701_v29  ;;  %vm746_vm0 = vcmp.gt.f32.partialorder %v741_v35, 0.0 }
 0x14d   :  { %v1260_v43 = vadd.f32 -1.0, %v1650_v38 }
 0x14e   :  { %v1652_v44 = vpop.eup %1651  ;;  %v773_v47 = vpack.c.bf16 %v489_v40, %v487_v39  ;;  %1653 = vpow2.f32 %v751_v41  ;;  %v753_v48 = vmul.f32 1.442695, %v715_v42  ;;  %vm747_vm15 = vcmp.gt.f32.partialorder %v715_v42, 0.0 }
 0x14f   :  { %v482_v50 = vmul.f32 1.6732632, %v1260_v43  ;;  %v728_v51 = vpop.f32.mrf.mxu2  ;;  %v1389_v54 = vadd.f32 -1.0, %v1652_v44 }
 0x150   :  { %1655 = vpow2.f32 %v753_v48  ;;  %v729_v52 = vadd.f32 %v728_v51, %v526_v22  ;;  %1069 = vmatmul.bf16.vlgmr.msrb.gmra.mxu2 %v773_v47  ;;  %v742_v55 = vpop.f32.mrf.mxu3  ;;  %v1626_v22 = vld [vmem:[%s1873_s6] ss:$0 sm:$0xff]  ;;  %s1744_s6 = smov 128  }
 0x151   :  { %v486_v53 = vsel %vm466_vm13, %v461_v14, %v482_v50  ;;  %v761_v62 = vmul.f32 1.6732632, %v1389_v54 }
 0x152   :  { %v490_v57 = vmul.f32 1.050701, %v486_v53  ;;  %v743_v58 = vadd.f32 %v742_v55, %v729_v52 }
 0x153   :  { %v765_v2 = vsel %vm745_vm14, %v713_v21, %v761_v62 }
 0x154   :  { %v1654_v59 = vpop.eup %1653  ;;  %v774_v60 = vpack.c.bf16 %v490_v57, %v488_v56  ;;  %v755_v61 = vmul.f32 1.442695, %v743_v58  ;;  %v769_v46 = vmul.f32 1.050701, %v765_v2  ;;  %vm748_vm1 = vcmp.gt.f32.partialorder %v743_v58, 0.0 }
 0x155   :  { %v1390_v63 = vadd.f32 -1.0, %v1654_v59 }
 0x156   :  { %v1656_v0 = vpop.eup %1655  ;;  %1657 = vpow2.f32 %v755_v61  ;;  %1083 = vmatmul.bf16.vlgmr.msrb.gmra.mxu3 %v774_v60 }
 0x157   :  { %v1391_v1 = vadd.f32 -1.0, %v1656_v0  ;;  %v762_v3 = vmul.f32 1.6732632, %v1390_v63 }
 0x159   :  { %v763_v45 = vmul.f32 1.6732632, %v1391_v1  ;;  %v766_v9 = vsel %vm746_vm0, %v741_v35, %v762_v3 }
 0x15a   :  { %v770_v12 = vmul.f32 1.050701, %v766_v9 }
 0x15b   :  { %v767_v4 = vsel %vm747_vm15, %v715_v42, %v763_v45 }
 0x15c   :  { %v1658_v5 = vpop.eup %1657  ;;  %v771_v6 = vmul.f32 1.050701, %v767_v4 }
 0x15d   :  { %v1392_v7 = vadd.f32 -1.0, %v1658_v5 }
 0x15e   :  { %v807_v8 = vpack.c.bf16 %v771_v6, %v769_v46 }
 0x15f   :  { %v764_v10 = vmul.f32 1.6732632, %v1392_v7 }
 0x160   :  { %945 = vmatmul.bf16.vlgmr.msrb.gmra.mxu0 %v807_v8 }
 0x161   :  { %v768_v11 = vsel %vm748_vm1, %v743_v58, %v764_v10 }
 0x162   :  { %v772_v13 = vmul.f32 1.050701, %v768_v11 }
 0x164   :  { %v808_v14 = vpack.c.bf16 %v772_v13, %v770_v12 }
 0x166   :  { %959 = vmatmul.bf16.vlgmr.msrb.gmra.mxu1 %v808_v14 }
 0x1d3   :  { %v1070_v17 = vpop.f32.mrf.mxu2 }
 0x1d9   :  { %v1084_v20 = vpop.f32.mrf.mxu3 }
 0x1db   :  { %v1072_v30 = vpop.f32.mrf.mxu2 }
 0x1dd   :  { %v946_v16 = vpop.f32.mrf.mxu0 }
 0x1e1   :  { %v1086_v32 = vpop.f32.mrf.mxu3 }
 0x1e3   :  { %v960_v18 = vpop.f32.mrf.mxu1 }
 0x1e4   :  { %v961_v19 = vadd.f32 %v960_v18, %v946_v16 }
 0x1e5   :  { %v948_v25 = vpop.f32.mrf.mxu0 }
 0x1e6   :  { %v1071_v21 = vadd.f32 %v1070_v17, %v961_v19 }
 0x1e8   :  { %v1085_v23 = vadd.f32 %v1084_v20, %v1071_v21 }
 0x1ea   :  { %v1093_v24 = vadd.f32 %v1626_v22, %v1085_v23 }
 0x1eb   :  { %v962_v26 = vpop.f32.mrf.mxu1 }
 0x1ec   :  { %1095 = vst [vmem:[#allocation7] sm:$0xff] %v1093_v24  ;;  %v963_v27 = vadd.f32 %v962_v26, %v948_v25 }
 0x1ee   :  { %v1073_v31 = vadd.f32 %v1072_v30, %v963_v27 }
 0x1f0   :  { %v1087_v28 = vadd.f32 %v1086_v32, %v1073_v31 }
 0x1f2   :  { %v1094_v33 = vadd.f32 %v1626_v22, %v1087_v28 }
 0x1f4   :  { %1096 = vst [vmem:[#allocation7 + $0x8] sm:$0xff] %v1094_v33 }
 0x1f5   :  { %1109 = dma.vmem_to_hbm [thread:$0]  %s1102_s24, 256, %s1104_s27, [#allocation4], %s1744_s6, %s1744_s6, %s1745_s28  }
 0x1f6   :  { %1735 = dma.done.wait [#allocation4], 256  }
 0x1f7   :  { %1736 = vsyncadd [#allocation4], 4294967040 }
 0x1f8   :  { %1114 = vsyncpa [#allocation3], 1 }
 0x1f9   :  { %1115 = vsyncpa [#allocation6], 1 }
 0x1fa   :  { %1116 = vsyncpa [#allocation4], 1 }

</bundles_post_ra>
